<compile_context>
chip_gen: v5e
topology: v5e:2x2
jax: 0.10.0
libtpu: 0.0.40
codegen_flags: <defaults>
</compile_context>

<pallas_src>
import functools

import jax
import jax.numpy as jnp
from jax.experimental import pallas as pl
from jax.experimental.pallas import tpu as pltpu

KH = KW = 4
STRIDE = 2
PAD = 1
NEG_SLOPE = 0.2
BN_EPS = 1e-5
LANE = 128


def _round_up(x, m):
    return (x + m - 1) // m * m


def _pick_hw_tile(hw, k_pad, c_pad, budget_bytes):
    """Largest row tile that (a) fits the per-step VMEM budget and (b) divides hw."""
    fixed = k_pad * c_pad * 2 + 8 * c_pad * 4          # resident bf16 weight + vectors

    def per_step(t):
        return (2 * t * k_pad * 2      # double-buffered bf16 patch blocks (pass 1)
                + 2 * t * c_pad * 2    # double-buffered bf16 y blocks
                + 3 * t * c_pad * 4)   # in-kernel f32 temporaries / pass-2 out blocks

    max_rows = 8
    for t in (4096, 2048, 1024, 512, 256, 128, 64, 32, 16, 8):
        if fixed + per_step(t) <= budget_bytes:
            max_rows = t
            break
    if hw <= max_rows:
        return hw
    # Prefer a lane-dense (multiple-of-128) tile that divides hw exactly.
    t = (max_rows // LANE) * LANE
    while t >= LANE:
        if hw % t == 0:
            return t
        t -= LANE
    # Rare fallback (hw has no suitable divisor): whole-image tile.
    return hw


def _conv_stats_kernel(p_ref, w_ref, b_ref, y_ref, sum_ref, ssq_ref):
    """Pass 1: conv-as-matmul + bias + LeakyReLU; per-image channel sum / sum-sq."""
    j = pl.program_id(1)                                  # hw tile index (reduction axis)

    y = jnp.dot(p_ref[...], w_ref[...], preferred_element_type=jnp.float32)
    y = y + b_ref[...]
    y = jnp.where(y >= 0.0, y, NEG_SLOPE * y)             # LeakyReLU(0.2)
    y_ref[...] = y.astype(y_ref.dtype)                    # bf16 intermediate to HBM

    @pl.when(j == 0)
    def _():
        sum_ref[...] = jnp.zeros_like(sum_ref)
        ssq_ref[...] = jnp.zeros_like(ssq_ref)

    # Stats from the f32 tile (pre-cast); tile rows always valid (t_hw divides Ho*Wo).
    sum_ref[...] += jnp.sum(y, axis=0, keepdims=True)
    ssq_ref[...] += jnp.sum(y * y, axis=0, keepdims=True)


def _bn_apply_kernel(y_ref, scale_ref, shift_ref, o_ref, *, cout):
    """Pass 2: y*scale + shift (BN folded), transpose to channel-major, store NCHW."""
    y = y_ref[...].astype(jnp.float32) * scale_ref[...] + shift_ref[...]
    o_ref[...] = jnp.transpose(y)[:cout, :].astype(o_ref.dtype)


def conv_block_forward(x_nchw, weight, bias, gamma, beta):
    N, Cin, H, W = x_nchw.shape
    Cout = weight.shape[0]
    Ho = (H + 2 * PAD - KH) // STRIDE + 1
    Wo = (W + 2 * PAD - KW) // STRIDE + 1
    HW = Ho * Wo
    K = Cin * KH * KW

    c_pad = _round_up(Cout, LANE)          # lane-dense MXU N dimension
    k_pad = _round_up(K, LANE)             # lane-dense MXU K dimension
    t_hw = _pick_hw_tile(HW, k_pad, c_pad, budget_bytes=40 * 1024 * 1024)
    n_hw = HW // t_hw                      # t_hw divides HW exactly

    # --- im2col (plain-JAX glue, bf16 to halve patch-matrix HBM traffic) ---
    xb = x_nchw.astype(jnp.bfloat16)
    x_sp = jnp.pad(xb, ((0, 0), (0, 0), (PAD, PAD), (PAD, PAD)))
    cols = []
    for kh in range(KH):
        for kw in range(KW):
            cols.append(
                x_sp[:, :, kh:kh + STRIDE * Ho:STRIDE, kw:kw + STRIDE * Wo:STRIDE])
    patches = jnp.stack(cols, axis=2)                      # [N, Cin, KH*KW, Ho, Wo]
    patches = patches.transpose(0, 3, 4, 1, 2).reshape(N, HW, K)
    patches = jnp.pad(patches, ((0, 0), (0, 0), (0, k_pad - K)))

    # Weight layout matches PyTorch [Cout, Cin, KH, KW] -> [K, Cout], padded & bf16.
    w2 = weight.reshape(Cout, K).T.astype(jnp.bfloat16)
    w2 = jnp.pad(w2, ((0, k_pad - K), (0, c_pad - Cout)))
    b2 = jnp.pad(bias.reshape(1, Cout).astype(jnp.float32),
                 ((0, 0), (0, c_pad - Cout)))
    g2 = jnp.pad(gamma.reshape(1, Cout).astype(jnp.float32),
                 ((0, 0), (0, c_pad - Cout)))
    be2 = jnp.pad(beta.reshape(1, Cout).astype(jnp.float32),
                  ((0, 0), (0, c_pad - Cout)))

    vmem_cap = 48 * 1024 * 1024   # <= v7x's 64 MiB physical; far under v5e/v6e 128 MiB

    # Pass 1: matmul + bias + LeakyReLU, streaming hw tiles per image; per-image stats.
    y_pre, psum, pssq = pl.pallas_call(
        _conv_stats_kernel,
        out_shape=(
            jax.ShapeDtypeStruct((N, HW, c_pad), jnp.bfloat16),
            jax.ShapeDtypeStruct((N, 1, c_pad), jnp.float32),
            jax.ShapeDtypeStruct((N, 1, c_pad), jnp.float32),
        ),
        grid=(N, n_hw),
        in_specs=[
            pl.BlockSpec((None, t_hw, k_pad), lambda n, j: (n, j, 0)),
            pl.BlockSpec((k_pad, c_pad), lambda n, j: (0, 0)),
            pl.BlockSpec((1, c_pad), lambda n, j: (0, 0)),
        ],
        out_specs=(
            pl.BlockSpec((None, t_hw, c_pad), lambda n, j: (n, j, 0)),
            pl.BlockSpec((None, 1, c_pad), lambda n, j: (n, 0, 0)),
            pl.BlockSpec((None, 1, c_pad), lambda n, j: (n, 0, 0)),
        ),
        compiler_params=pltpu.CompilerParams(
            dimension_semantics=("parallel", "arbitrary"),
            vmem_limit_bytes=vmem_cap),
    )(patches, w2, b2)

    # Fold per-image partial stats and build BN scale/shift once (tiny (1,C) JAX op).
    m_total = float(N * HW)
    ch_sum = jnp.sum(psum, axis=0)                         # (1, c_pad)
    ch_ssq = jnp.sum(pssq, axis=0)
    mean = ch_sum / m_total
    var = jnp.maximum(ch_ssq / m_total - mean * mean, 0.0)  # biased var (training BN)
    scale = g2 * jax.lax.rsqrt(var + BN_EPS)
    shift = be2 - mean * scale

    # Pass 2: normalize + in-kernel transpose, writing NCHW blocks directly.
    out = pl.pallas_call(
        functools.partial(_bn_apply_kernel, cout=Cout),
        out_shape=jax.ShapeDtypeStruct((N, Cout, HW), jnp.float32),
        grid=(N, n_hw),
        in_specs=[
            pl.BlockSpec((None, t_hw, c_pad), lambda n, j: (n, j, 0)),
            pl.BlockSpec((1, c_pad), lambda n, j: (0, 0)),
            pl.BlockSpec((1, c_pad), lambda n, j: (0, 0)),
        ],
        out_specs=pl.BlockSpec((None, Cout, t_hw), lambda n, j: (n, 0, j)),
        compiler_params=pltpu.CompilerParams(
            dimension_semantics=("parallel", "parallel"),
            vmem_limit_bytes=vmem_cap),
    )(y_pre, scale, shift)

    return out.reshape(N, Cout, Ho, Wo)    # free reshape -- no trailing XLA transpose


def reference_forward(x, weight, bias, gamma, beta):
    y = jax.lax.conv_general_dilated(
        x, weight, window_strides=(STRIDE, STRIDE),
        padding=((PAD, PAD), (PAD, PAD)),
        dimension_numbers=("NCHW", "OIHW", "NCHW"))
    y = y + bias.reshape(1, -1, 1, 1)
    y = jnp.where(y >= 0.0, y, NEG_SLOPE * y)
    mean = jnp.mean(y, axis=(0, 2, 3), keepdims=True)
    var = jnp.mean((y - mean) ** 2, axis=(0, 2, 3), keepdims=True)
    y = (y - mean) * jax.lax.rsqrt(var + BN_EPS)
    return y * gamma.reshape(1, -1, 1, 1) + beta.reshape(1, -1, 1, 1)


if __name__ == "__main__":
    key = jax.random.PRNGKey(0)
    kx, kw, kb = jax.random.split(key, 3)

    N, Cin, H, W = 2, 4, 16, 16
    Cout = 8

    x = jax.random.normal(kx, (N, Cin, H, W), dtype=jnp.float32)

    # PyTorch-like Conv2d init bounds.
    fan_in = Cin * KH * KW
    bound = 1.0 / (fan_in ** 0.5)
    weight = jax.random.uniform(kw, (Cout, Cin, KH, KW), jnp.float32,
                                minval=-bound, maxval=bound)
    bias = jax.random.uniform(kb, (Cout,), jnp.float32,
                              minval=-bound, maxval=bound)
    # BatchNorm2d affine defaults: gamma=1, beta=0.
    gamma = jnp.ones((Cout,), jnp.float32)
    beta = jnp.zeros((Cout,), jnp.float32)

    out = jax.block_until_ready(conv_block_forward(x, weight, bias, gamma, beta))

    ref = reference_forward(x, weight, bias, gamma, beta)
    assert out.shape == (N, Cout, H // 2, W // 2)
    # bf16 matmul operands + bf16 intermediate -> looser tolerance than pure f32.
    assert jnp.allclose(out, ref, atol=3e-2, rtol=3e-2)
    print("KERNEL_OK")
</pallas_src>

<mosaic_0001>
module attributes {stable_mosaic.version = 11 : i64} {
  func.func @_conv_stats_kernel(%arg0: i32, %arg1: i32, %arg2: memref<1x64x128xbf16, #tpu.memory_space<vmem>>, %arg3: memref<128x128xbf16, #tpu.memory_space<vmem>>, %arg4: memref<1x128xf32, #tpu.memory_space<vmem>>, %arg5: memref<1x64x128xbf16, #tpu.memory_space<vmem>>, %arg6: memref<1x1x128xf32, #tpu.memory_space<vmem>>, %arg7: memref<1x1x128xf32, #tpu.memory_space<vmem>>) attributes {dimension_semantics = [#tpu.dimension_semantics<parallel>, #tpu.dimension_semantics<arbitrary>], iteration_bounds = array<i64: 2, 1>, scalar_prefetch = 0 : i64, scratch_operands = 0 : i64, tpu.core_type = #tpu.core_type<tc>, window_params = [{transform_indices = @transform_0, window_bounds = array<i64: 1, 64, 128>}, {pipeline_mode = #tpu.pipeline_mode<synchronous>, transform_indices = @transform_1, window_bounds = array<i64: 128, 128>}, {pipeline_mode = #tpu.pipeline_mode<synchronous>, transform_indices = @transform_2, window_bounds = array<i64: 1, 128>}, {transform_indices = @transform_3, window_bounds = array<i64: 1, 64, 128>}, {transform_indices = @transform_4, window_bounds = array<i64: 1, 1, 128>}, {transform_indices = @transform_5, window_bounds = array<i64: 1, 1, 128>}]} {
    %c0 = arith.constant 0 : index
    %c0_0 = arith.constant 0 : index
    %c0_1 = arith.constant 0 : index
    %0 = vector.load %arg2[%c0, %c0_0, %c0_1] : memref<1x64x128xbf16, #tpu.memory_space<vmem>>, vector<1x64x128xbf16>
    %1 = vector.shape_cast %0 : vector<1x64x128xbf16> to vector<64x128xbf16>
    %c0_2 = arith.constant 0 : index
    %c0_3 = arith.constant 0 : index
    %2 = vector.load %arg3[%c0_2, %c0_3] : memref<128x128xbf16, #tpu.memory_space<vmem>>, vector<128x128xbf16>
    %cst = arith.constant dense<0.000000e+00> : vector<64x128xf32>
    %3 = tpu.matmul %1, %2, %cst {dimension_numbers = #tpu.dot_dimension_numbers<[1], [0], [0], [1], [0, 0, 1, 1], [], []>} : vector<64x128xbf16>, vector<128x128xbf16>, vector<64x128xf32> -> vector<64x128xf32>
    %c0_4 = arith.constant 0 : index
    %c0_5 = arith.constant 0 : index
    %4 = vector.load %arg4[%c0_4, %c0_5] : memref<1x128xf32, #tpu.memory_space<vmem>>, vector<1x128xf32>
    %5 = vector.broadcast %4 : vector<1x128xf32> to vector<64x128xf32>
    %6 = arith.addf %3, %5 : vector<64x128xf32>
    %cst_6 = arith.constant 0.000000e+00 : f32
    %7 = vector.broadcast %cst_6 : f32 to vector<64x128xf32>
    %8 = arith.cmpf oge, %6, %7 : vector<64x128xf32>
    %cst_7 = arith.constant 2.000000e-01 : f32
    %9 = vector.broadcast %cst_7 : f32 to vector<64x128xf32>
    %10 = arith.mulf %9, %6 : vector<64x128xf32>
    %11 = arith.select %8, %6, %10 : vector<64x128xi1>, vector<64x128xf32>
    %12 = arith.truncf %11 : vector<64x128xf32> to vector<64x128xbf16>
    %c0_8 = arith.constant 0 : index
    %c0_9 = arith.constant 0 : index
    %c0_10 = arith.constant 0 : index
    %13 = vector.load %arg5[%c0_8, %c0_9, %c0_10] : memref<1x64x128xbf16, #tpu.memory_space<vmem>>, vector<1x64x128xbf16>
    %14 = vector.shape_cast %13 : vector<1x64x128xbf16> to vector<64x128xbf16>
    %15 = vector.shape_cast %12 : vector<64x128xbf16> to vector<1x64x128xbf16>
    tpu.vector_store %arg5[%c0_8, %c0_9, %c0_10], %15 {strides = array<i32>} : memref<1x64x128xbf16, #tpu.memory_space<vmem>>, vector<1x64x128xbf16>,
    %c0_i32 = arith.constant 0 : i32
    %16 = arith.cmpi eq, %arg1, %c0_i32 : i32
    %17 = arith.extui %16 : i1 to i32
    %c0_i32_11 = arith.constant 0 : i32
    %18 = arith.cmpi ne, %17, %c0_i32_11 : i32
    scf.if %18 {
      %cst_26 = arith.constant 0.000000e+00 : f32
      %36 = vector.broadcast %cst_26 : f32 to vector<1x128xf32>
      %c0_27 = arith.constant 0 : index
      %c0_28 = arith.constant 0 : index
      %c0_29 = arith.constant 0 : index
      %37 = vector.load %arg6[%c0_27, %c0_28, %c0_29] : memref<1x1x128xf32, #tpu.memory_space<vmem>>, vector<1x1x128xf32>
      %38 = vector.shape_cast %37 : vector<1x1x128xf32> to vector<1x128xf32>
      %39 = vector.shape_cast %36 : vector<1x128xf32> to vector<1x1x128xf32>
      tpu.vector_store %arg6[%c0_27, %c0_28, %c0_29], %39 {strides = array<i32>} : memref<1x1x128xf32, #tpu.memory_space<vmem>>, vector<1x1x128xf32>,
      %cst_30 = arith.constant 0.000000e+00 : f32
      %40 = vector.broadcast %cst_30 : f32 to vector<1x128xf32>
      %c0_31 = arith.constant 0 : index
      %c0_32 = arith.constant 0 : index
      %c0_33 = arith.constant 0 : index
      %41 = vector.load %arg7[%c0_31, %c0_32, %c0_33] : memref<1x1x128xf32, #tpu.memory_space<vmem>>, vector<1x1x128xf32>
      %42 = vector.shape_cast %41 : vector<1x1x128xf32> to vector<1x128xf32>
      %43 = vector.shape_cast %40 : vector<1x128xf32> to vector<1x1x128xf32>
      tpu.vector_store %arg7[%c0_31, %c0_32, %c0_33], %43 {strides = array<i32>} : memref<1x1x128xf32, #tpu.memory_space<vmem>>, vector<1x1x128xf32>,
    } else {
    }
    %c0_12 = arith.constant 0 : index
    %c0_13 = arith.constant 0 : index
    %c0_14 = arith.constant 0 : index
    %19 = vector.load %arg6[%c0_12, %c0_13, %c0_14] : memref<1x1x128xf32, #tpu.memory_space<vmem>>, vector<1x1x128xf32>
    %20 = vector.shape_cast %19 : vector<1x1x128xf32> to vector<1x128xf32>
    %cst_15 = arith.constant dense<0.000000e+00> : vector<128xf32>
    %21 = vector.multi_reduction <add>, %11, %cst_15 [0] : vector<64x128xf32> to vector<128xf32>
    %22 = vector.shape_cast %21 : vector<128xf32> to vector<1x128xf32>
    %23 = arith.addf %20, %22 : vector<1x128xf32>
    %c0_16 = arith.constant 0 : index
    %c0_17 = arith.constant 0 : index
    %c0_18 = arith.constant 0 : index
    %24 = vector.load %arg6[%c0_16, %c0_17, %c0_18] : memref<1x1x128xf32, #tpu.memory_space<vmem>>, vector<1x1x128xf32>
    %25 = vector.shape_cast %24 : vector<1x1x128xf32> to vector<1x128xf32>
    %26 = vector.shape_cast %23 : vector<1x128xf32> to vector<1x1x128xf32>
    tpu.vector_store %arg6[%c0_16, %c0_17, %c0_18], %26 {strides = array<i32>} : memref<1x1x128xf32, #tpu.memory_space<vmem>>, vector<1x1x128xf32>,
    %c0_19 = arith.constant 0 : index
    %c0_20 = arith.constant 0 : index
    %c0_21 = arith.constant 0 : index
    %27 = vector.load %arg7[%c0_19, %c0_20, %c0_21] : memref<1x1x128xf32, #tpu.memory_space<vmem>>, vector<1x1x128xf32>
    %28 = vector.shape_cast %27 : vector<1x1x128xf32> to vector<1x128xf32>
    %29 = arith.mulf %11, %11 : vector<64x128xf32>
    %cst_22 = arith.constant dense<0.000000e+00> : vector<128xf32>
    %30 = vector.multi_reduction <add>, %29, %cst_22 [0] : vector<64x128xf32> to vector<128xf32>
    %31 = vector.shape_cast %30 : vector<128xf32> to vector<1x128xf32>
    %32 = arith.addf %28, %31 : vector<1x128xf32>
    %c0_23 = arith.constant 0 : index
    %c0_24 = arith.constant 0 : index
    %c0_25 = arith.constant 0 : index
    %33 = vector.load %arg7[%c0_23, %c0_24, %c0_25] : memref<1x1x128xf32, #tpu.memory_space<vmem>>, vector<1x1x128xf32>
    %34 = vector.shape_cast %33 : vector<1x1x128xf32> to vector<1x128xf32>
    %35 = vector.shape_cast %32 : vector<1x128xf32> to vector<1x1x128xf32>
    tpu.vector_store %arg7[%c0_23, %c0_24, %c0_25], %35 {strides = array<i32>} : memref<1x1x128xf32, #tpu.memory_space<vmem>>, vector<1x1x128xf32>,
    return
  }
  func.func @transform_0(%arg0: i32, %arg1: i32) -> (i32, i32, i32) {
    %c0_i32 = arith.constant 0 : i32
    %c0_i32_0 = arith.constant 0 : i32
    return %arg0, %arg1, %c0_i32 : i32, i32, i32
  }
  func.func @transform_1(%arg0: i32, %arg1: i32) -> (i32, i32) {
    %c0_i32 = arith.constant 0 : i32
    %c0_i32_0 = arith.constant 0 : i32
    %c0_i32_1 = arith.constant 0 : i32
    return %c0_i32, %c0_i32_0 : i32, i32
  }
  func.func @transform_2(%arg0: i32, %arg1: i32) -> (i32, i32) {
    %c0_i32 = arith.constant 0 : i32
    %c0_i32_0 = arith.constant 0 : i32
    %c0_i32_1 = arith.constant 0 : i32
    return %c0_i32, %c0_i32_0 : i32, i32
  }
  func.func @transform_3(%arg0: i32, %arg1: i32) -> (i32, i32, i32) {
    %c0_i32 = arith.constant 0 : i32
    %c0_i32_0 = arith.constant 0 : i32
    return %arg0, %arg1, %c0_i32 : i32, i32, i32
  }
  func.func @transform_4(%arg0: i32, %arg1: i32) -> (i32, i32, i32) {
    %c0_i32 = arith.constant 0 : i32
    %c0_i32_0 = arith.constant 0 : i32
    %c0_i32_1 = arith.constant 0 : i32
    return %arg0, %c0_i32, %c0_i32_0 : i32, i32, i32
  }
  func.func @transform_5(%arg0: i32, %arg1: i32) -> (i32, i32, i32) {
    %c0_i32 = arith.constant 0 : i32
    %c0_i32_0 = arith.constant 0 : i32
    %c0_i32_1 = arith.constant 0 : i32
    return %arg0, %c0_i32, %c0_i32_0 : i32, i32, i32
  }
}

</mosaic_0001>

<bundles_post_ra>
// kernel: tpu_custom_call.1
= control target key start
LH: loop header
LB: loop body
LE: loop exit
PB: predicated region body
PF: predicated region fallthrough
CT: control target
= control target key end

     0   :  { %s1410_s0 = inlined_call_operand.hbm [shape: bf16[2,64,128], index: 0, kind: input, shape index: {}]   ;;  %s1411_s1 = inlined_call_operand.hbm [shape: bf16[128,128], index: 1, kind: input, shape index: {}]   ;;  %s1412_s2 = inlined_call_operand.vmem [shape: f32[1,128], index: 2, kind: input, shape index: {}]   ;;  %s1413_s3 = inlined_call_operand.hbm [shape: bf16[2,64,128], index: 3, kind: output, shape index: {0}]   ;;  %s1414_s4 = inlined_call_operand.hbm [shape: f32[2,1,128], index: 4, kind: output, shape index: {1}]   ;;  %s1415_s5 = inlined_call_operand.hbm [shape: f32[2,1,128], index: 5, kind: output, shape index: {2}]  }
   0x1   :  { %1422 = sst [smem:[#allocation17_spill]] %s1411_s1 }
   0x2   :  { %11 = vsyncpa [#allocation3], 0 }
   0x3   :  { %13 = vsyncpa [#allocation3 + $0x1], 0 }
   0x4   :  { %14 = vsyncpa [#allocation6], 0 }
   0x5   :  { %15 = vsyncpa [#allocation4], 0 }
   0x6   :  { %17 = vsyncpa [#allocation4 + $0x1], 0 }
   0x7   :  { %18 = vsyncpa [#allocation9], 0 }
   0x8   :  { %20 = vsyncpa [#allocation9 + $0x1], 0  ;;  %s1174_s18 = smov 0   ;;  %s1176_s19 = smov 0  }
   0x9   :  { %s1178_s20 = smov 0   ;;  %s1180_s21 = smov 0  }
   0xa   :  { %s1182_s22 = smov 0   ;;  %s1184_s23 = smov 0  }
   0xb LB: > { %1423 = sst [smem:[#allocation15_spill]] %s1136_s23  ;;  %s1205_s24 = sadd.s32 4294967295, %s1136_s23   ;;  %s1136_s23 = sphi %s1184_s23, %s26_s23   ;;  %s1132_s22 = sphi %s1182_s22, %s1440_s22   ;;  %s1128_s21 = sphi %s1180_s21, %s1439_s21   ;;  %s1124_s20 = sphi %s1178_s20, %s1438_s20   ;;  %s1120_s19 = sphi %s1176_s19, %s1437_s19   ;;  %s1116_s18 = sphi %s1174_s18, %s1436_s18  }
   0xc   : > { %s1416_s25 = sadd.s32 4294967294, %s1136_s23   ;;  %p60_p0 = scmp.ne.s32.totalorder %s1120_s19, %s1116_s18 }
   0xd   : > { %p61_p1 = scmp.eq.s32.totalorder %s1205_s24, 0  ;;  %p128_p2 = scmp.eq.s32.totalorder %s1205_s24, 1 }
   0xe   : > { %p134_p3 = scmp.eq.s32.totalorder %s1416_s25, 1  ;;  %p717_p5 = scmp.ge.s32.totalorder %s1136_s23, 1 }
   0xf   : > { %p1216_p4 = por %p61_p1, %p60_p0  ;;  %p193_p7 = scmp.lt.s32.totalorder %s1136_s23, 3 }
  0x10   : > { %p1221_p6 = por %p134_p3, %p60_p0  ;;  %s1426_s1 = sld [smem:[#allocation17_spill]] }
  0x11   : > { %p1229_p8 = pnand %p717_p5, %p193_p7  ;;  %s1138_s7 = smov [#allocation5]  }
  0x12   : > { %s206_s8 = sshll.u32 %s1138_s7, 4  ;;  %p719_p11 = scmp.ge.s32.totalorder %s1136_s23, 2  ;;  %s207_s8 = int_to_ptr.vmem [resolvable:$true] %s206_s8 }
  0x13   : > { %p853_p9 = pneg %p1229_p8  ;;  %s1417_s9 = smov 64  }
  0x14   : > { %s1418_s10 = smov 4   ;;  %s38_s11 = sadd.s32 1, %s1132_s22 }
  0x15   : > { %p854_p10 = pnand %p853_p9, %p61_p1  ;;  %p40_p12 = scmp.ge.s32.totalorder %s38_s11, 2 }
  0x16   : > { %s204_s30 = sshll.u32 %s1426_s1, 4  ;;  %s47_s12 = sadd.s32 1, %s1124_s20  ;;  %s205_s30 = int_to_ptr.hbm [resolvable:$true] %s204_s30 }
  0x17   : > { %856 = dma.hbm_to_vmem [thread:$0]  (!%p854_p10), %s205_s30, 1024, %s207_s8, [#allocation6], %s1417_s9, %s1417_s9, %s1418_s10  }
  0x18   : > { %p54_p13 = scmp.ne.s32.totalorder %s1124_s20, %s1120_s19  ;;  %p55_p0 = scmp.eq.s32.totalorder %s1136_s23, 0 }
  0x19   : > { %s1442_s11 = smov (%p40_p12, %s38_s11), 0  ;;  %p872_p7 = scmp.lt.s32.totalorder %s1136_s23, 2 }
  0x1a   : > { %1428 = sst [smem:[#allocation16_spill]] %s1442_s11  ;;  %p1248_p3 = por %p55_p0, %p54_p13 }
  0x1b   : > { %p1254_p5 = por %p128_p2, %p54_p13  ;;  %s42_s15 = ssub.s32 %s1132_s22, %s1442_s11 }
  0x1c   : > { %p45_p9 = scmp.eq.s32.totalorder %s42_s15, 0  ;;  %s223_s16 = sand.u32 1, %s1124_s20  }
  0x1d   : > { %s720_s17 = sshll.u32 %s223_s16, 5  ;;  %s780_s29 = sshll.u32 %s1132_s22, 5 }
  0x1e   : > { %s1263_s28 = scalar_select %p45_p9, %s1124_s20, %s47_s12  }
  0x1f   : > { %s234_s8 = scalar_lea.hbm %s1410_s0, %s780_s29  ;;  %s227_s25 = scalar_lea.vmem [#allocation2], %s720_s17 }
  0x20   : > { %s237_s9 = sshll.u32 %s227_s25, 4  ;;  %s235_s10 = sshll.u32 %s234_s8, 4  ;;  %s238_s9 = int_to_ptr.vmem [resolvable:$true] %s237_s9  ;;  %s236_s10 = int_to_ptr.hbm [resolvable:$true] %s235_s10 }
  0x21   : > { %p858_p2 = pnand %p872_p7, %p1248_p3  ;;  %s224_s1 = scalar_lea.sflag [#allocation3], %s223_s16 }
  0x22   : > { %s1431_s11 = smov 4   ;;  %s1432_s23 = smov 64  }
  0x23   : > { %860 = dma.hbm_to_vmem [thread:$0]  (!%p858_p2), %s236_s10, 512, %s238_s9, %s224_s1, %s1432_s23, %s1432_s23, %s1431_s11  }
  0x24   : > { %249 = sbr.rel (%p1229_p8) target bundleno = 258 (0x102), region = 32  ;;  %s1277_s12 = sand.u32 (!%p1229_p8), 1, %s1120_s19  }
  0x25   : > { %s724_s25 = sshll.u32 (!%p1229_p8), %s1277_s12, 5  ;;  %s252_s15 = scalar_lea.sflag (!%p1229_p8), [#allocation3], %s1277_s12 }
  0x26   : > { %s1283_s13 = scalar_lea.vmem (!%p1229_p8), [#allocation2], %s724_s25 }
  0x29   : > { %1099 = dma.done.wait (%p1216_p4), %s252_s15, 512  }
  0x2a   : > { %1101 = vsyncadd (%p1216_p4), %s252_s15, 4294966784 }
  0x2b   : > { %1103 = dma.done.wait (%p61_p1), [#allocation6], 1024  }
  0x2c   : > { %1105 = vsyncadd (%p61_p1), [#allocation6], 4294966272  ;;  %v792_v0 = vld [vmem:[#allocation5 + $0x38] sm:$0xff]  ;;  %v791_v1 = vld [vmem:[#allocation5 + $0x30] sm:$0xff]  ;;  %s1301_s26 = scalar_lea.vmem [#allocation8], %s1277_s12  ;;  %v1141_v16 = vmov 0.0  }
  0x2d   : > { %398 = vmatpush.bf16.msra.mxu0 %v792_v0  ;;  %817 = vmatpush.bf16.msra.mxu1 %v792_v0  ;;  %v790_v2 = vld [vmem:[#allocation5 + $0x28] sm:$0xff]  ;;  %v789_v3 = vld [vmem:[#allocation5 + $0x20] sm:$0xff]  ;;  %v788_v4 = vld [vmem:[#allocation5 + $0x18] sm:$0xff]  ;;  %471 = vst [vmem:[%s1301_s26] sm:$0x1] %v1141_v16  ;;  %s1305_s6 = scalar_lea.vmem [#allocation10], %s1277_s12  ;;  %s793_s9 = sshll.u32 %s1128_s21, 5 }
  0x2e   : > { %818 = vmatpush.bf16.msra.mxu2 %v792_v0  ;;  %819 = vmatpush.bf16.msra.mxu3 %v792_v0  ;;  %v787_v5 = vld [vmem:[#allocation5 + $0x10] sm:$0xff]  ;;  %v786_v6 = vld [vmem:[#allocation5 + $0x8] sm:$0xff]  ;;  %v785_v7 = vld [vmem:[#allocation5] sm:$0xff]  ;;  %472 = vst [vmem:[%s1305_s6] sm:$0x1] %v1141_v16  ;;  %s1311_s10 = scalar_lea.vmem [#allocation7], %s724_s25  ;;  %s535_s17 = scalar_lea.hbm %s1413_s3, %s793_s9 }
  0x2f   : > { %v781_v8 = vld [vmem:[%s1283_s13] sm:$0xff]  ;;  %v782_v9 = vld [vmem:[%s1283_s13 + $0x8] sm:$0xff]  ;;  %v783_v10 = vld [vmem:[%s1283_s13 + $0x10] sm:$0xff]  ;;  %s536_s29 = sshll.u32 %s1311_s10, 4  ;;  %s538_s30 = sshll.u32 %s535_s17, 4  ;;  %s1321_s29 = int_to_ptr.vmem [resolvable:$true] %s536_s29  ;;  %s539_s30 = int_to_ptr.hbm [resolvable:$true] %s538_s30 }
  0x30   : > { %v784_v11 = vld [vmem:[%s1283_s13 + $0x18] sm:$0xff]  ;;  %v929_v12 = vld [vmem:[%s1412_s2] ss:$0 sm:$0xff]  ;;  %s514_s7 = scalar_lea.sflag [#allocation4], %s1277_s12  ;;  %s1004_s8 = sshra.s32 %s539_s30, 4  ;;  %s1005_s8 = int_to_ptr.hbm [resolvable:$true] %s1004_s8 }
  0x31   : > { %399 = vmatpush.bf16.msra.mxu0 %v791_v1  ;;  %820 = vmatpush.bf16.msra.mxu1 %v791_v1  ;;  %s1006_s25 = scalar_lea.hbm %s1005_s8, 32  ;;  %s1010_s1 = scalar_lea.hbm %s1413_s3, 64 }
  0x32   : > { %821 = vmatpush.bf16.msra.mxu2 %v791_v1  ;;  %822 = vmatpush.bf16.msra.mxu3 %v791_v1  ;;  %p1007_p1 = scmp.ne.s32.totalorder %s1005_s8, %s1006_s25  ;;  %p1011_p10 = scmp.lt.s32.totalorder %s1005_s8, %s1413_s3 }
  0x33   : > { %p1012_p12 = scmp.lt.s32.totalorder %s1010_s1, %s1006_s25 }
  0x34   : > { %p1008_p4 = pnand %p1007_p1, %p1254_p5 }
  0x35   : > { %400 = vmatpush.bf16.msra.mxu0 %v790_v2  ;;  %823 = vmatpush.bf16.msra.mxu1 %v790_v2  ;;  %p1013_p13 = por %p1012_p12, %p1011_p10 }
  0x36   : > { %824 = vmatpush.bf16.msra.mxu2 %v790_v2  ;;  %825 = vmatpush.bf16.msra.mxu3 %v790_v2  ;;  %p1009_p8 = pneg %p1008_p4 }
  0x38   : > { %p1014_p0 = pnand %p1013_p13, %p1009_p8 }
  0x39   : > { %401 = vmatpush.bf16.msra.mxu0 %v789_v3  ;;  %826 = vmatpush.bf16.msra.mxu1 %v789_v3 }
  0x3a   : > { %827 = vmatpush.bf16.msra.mxu2 %v789_v3  ;;  %828 = vmatpush.bf16.msra.mxu3 %v789_v3 }
  0x3d   : > { %402 = vmatpush.bf16.msra.mxu0 %v788_v4  ;;  %829 = vmatpush.bf16.msra.mxu1 %v788_v4 }
  0x3e   : > { %830 = vmatpush.bf16.msra.mxu2 %v788_v4  ;;  %831 = vmatpush.bf16.msra.mxu3 %v788_v4 }
  0x41   : > { %403 = vmatpush.bf16.msra.mxu0 %v787_v5  ;;  %832 = vmatpush.bf16.msra.mxu1 %v787_v5 }
  0x42   : > { %833 = vmatpush.bf16.msra.mxu2 %v787_v5  ;;  %834 = vmatpush.bf16.msra.mxu3 %v787_v5 }
  0x45   : > { %404 = vmatpush.bf16.msra.mxu0 %v786_v6  ;;  %835 = vmatpush.bf16.msra.mxu1 %v786_v6 }
  0x46   : > { %836 = vmatpush.bf16.msra.mxu2 %v786_v6  ;;  %837 = vmatpush.bf16.msra.mxu3 %v786_v6 }
  0x49   : > { %405 = vmatpush.bf16.msra.mxu0 %v785_v7  ;;  %838 = vmatpush.bf16.msra.mxu1 %v785_v7 }
  0x4a   : > { %839 = vmatpush.bf16.msra.mxu2 %v785_v7  ;;  %840 = vmatpush.bf16.msra.mxu3 %v785_v7 }
  0x4c   : > { %406 = vmatmul.bf16.vlgmr.msra.gmra.mxu0 %v781_v8  ;;  %411 = vmatmul.bf16.vlgmr.msra.gmra.mxu1 %v782_v9 }
  0x4d   : > { %416 = vmatmul.bf16.vlgmr.msra.gmra.mxu2 %v783_v10  ;;  %421 = vmatmul.bf16.vlgmr.msra.gmra.mxu3 %v784_v11 }
  0xc9   : > { %v407_v13 = vpop.f32.mrf.mxu0  ;;  %v412_v14 = vpop.f32.mrf.mxu1 }
  0xca   : > { %v408_v15 = vadd.f32 %v929_v12, %v407_v13  ;;  %v413_v17 = vadd.f32 %v929_v12, %v412_v14 }
  0xcc   : > { %v435_v18 = vmul.f32 0.2, %v408_v15  ;;  %vm427_vm0 = vcmp.ge.f32.partialorder %v408_v15, 0.0  ;;  %vm429_vm1 = vcmp.ge.f32.partialorder %v413_v17, 0.0  ;;  %v437_v21 = vmul.f32 0.2, %v413_v17 }
  0xce   : > { %v443_v24 = vsel %vm427_vm0, %v408_v15, %v435_v18  ;;  %v445_v31 = vsel %vm429_vm1, %v413_v17, %v437_v21 }
  0xcf   : > { %v490_v30 = vmul.f32 %v443_v24, %v443_v24  ;;  %v492_v40 = vmul.f32 %v445_v31, %v445_v31 }
  0xd0   : > { %v417_v19 = vpop.f32.mrf.mxu2  ;;  %v422_v20 = vpop.f32.mrf.mxu3 }
  0xd1   : > { %v409_v22 = vpop.f32.mrf.mxu0  ;;  %v414_v23 = vpop.f32.mrf.mxu1  ;;  %v418_v25 = vadd.f32 %v929_v12, %v417_v19  ;;  %v423_v32 = vadd.f32 %v929_v12, %v422_v20 }
  0xd2   : > { %v410_v26 = vadd.f32 %v929_v12, %v409_v22  ;;  %v415_v27 = vadd.f32 %v929_v12, %v414_v23 }
  0xd3   : > { %vm431_vm4 = vcmp.ge.f32.partialorder %v418_v25, 0.0  ;;  %v439_v33 = vmul.f32 0.2, %v418_v25  ;;  %vm433_vm5 = vcmp.ge.f32.partialorder %v423_v32, 0.0  ;;  %v441_v48 = vmul.f32 0.2, %v423_v32 }
  0xd4   : > { %vm428_vm2 = vcmp.ge.f32.partialorder %v410_v26, 0.0  ;;  %v436_v28 = vmul.f32 0.2, %v410_v26  ;;  %vm430_vm3 = vcmp.ge.f32.partialorder %v415_v27, 0.0  ;;  %v438_v29 = vmul.f32 0.2, %v415_v27 }
  0xd5   : > { %v447_v47 = vsel %vm431_vm4, %v418_v25, %v439_v33  ;;  %v449_v58 = vsel %vm433_vm5, %v423_v32, %v441_v48 }
  0xd6   : > { %v444_v34 = vsel %vm428_vm2, %v410_v26, %v436_v28  ;;  %v446_v35 = vsel %vm430_vm3, %v415_v27, %v438_v29  ;;  %v494_v54 = vmul.f32 %v447_v47, %v447_v47  ;;  %v496_v1 = vmul.f32 %v449_v58, %v449_v58 }
  0xd7   : > { %v797_v36 = vpack.c.bf16 %v444_v34, %v443_v24  ;;  %v474_v37 = vadd.f32 %v444_v34, %v443_v24  ;;  %v491_v38 = vmul.f32 %v444_v34, %v444_v34  ;;  %v802_v39 = vpack.c.bf16 %v446_v35, %v445_v31 }
  0xd8   : > { %v419_v41 = vpop.f32.mrf.mxu2  ;;  %v424_v42 = vpop.f32.mrf.mxu3  ;;  %v493_v49 = vmul.f32 %v446_v35, %v446_v35 }
  0xd9   : > { %798 = vst [vmem:[%s1311_s10] sm:$0xff] %v797_v36   ;;  %v498_v43 = vadd.f32 %v491_v38, %v490_v30  ;;  %v475_v44 = vadd.f32 %v474_v37, %v445_v31  ;;  %v420_v45 = vadd.f32 %v929_v12, %v419_v41  ;;  %v425_v46 = vadd.f32 %v929_v12, %v424_v42 }
  0xda   : > { %814 = vst [vmem:[%s1311_s10 + $0x8] sm:$0xff] %v802_v39  }
  0xdb   : > { %v476_v50 = vadd.f32 %v475_v44, %v446_v35  ;;  %v499_v51 = vadd.f32 %v498_v43, %v492_v40  ;;  %vm432_vm6 = vcmp.ge.f32.partialorder %v420_v45, 0.0  ;;  %v440_v52 = vmul.f32 0.2, %v420_v45 }
  0xdc   : > { %vm434_vm7 = vcmp.ge.f32.partialorder %v425_v46, 0.0  ;;  %v442_v53 = vmul.f32 0.2, %v425_v46 }
  0xdd   : > { %v500_v55 = vadd.f32 %v499_v51, %v493_v49  ;;  %v448_v56 = vsel %vm432_vm6, %v420_v45, %v440_v52  ;;  %v477_v57 = vadd.f32 %v476_v50, %v447_v47 }
  0xde   : > { %v807_v59 = vpack.c.bf16 %v448_v56, %v447_v47  ;;  %v450_v60 = vsel %vm434_vm7, %v425_v46, %v442_v53  ;;  %v495_v62 = vmul.f32 %v448_v56, %v448_v56 }
  0xdf   : > { %v478_v61 = vadd.f32 %v477_v57, %v448_v56  ;;  %v501_v63 = vadd.f32 %v500_v55, %v494_v54  ;;  %v812_v0 = vpack.c.bf16 %v450_v60, %v449_v58 }
  0xe0   : > { %815 = vst [vmem:[%s1311_s10 + $0x10] sm:$0xff] %v807_v59  }
  0xe1   : > { %v502_v2 = vadd.f32 %v501_v63, %v495_v62  ;;  %816 = vst [vmem:[%s1311_s10 + $0x18] sm:$0xff] %v812_v0   ;;  %v479_v3 = vadd.f32 %v478_v61, %v449_v58 }
  0xe2   : > { %1017 = shalt.err (!%p1014_p0)
}
  0xe3   : > { %s1142_s12 = smov 64   ;;  %s1143_s10 = smov 4   ;;  %v480_v4 = vadd.f32 %v479_v3, %v450_v60  ;;  %v497_v5 = vmul.f32 %v450_v60, %v450_v60  ;;  %v503_v6 = vadd.f32 %v502_v2, %v496_v1  ;;  %v473_v17 = vld [vmem:[%s1301_s26] sm:$0x1] }
  0xe4   : > { %847 = dma.vmem_to_hbm [thread:$0]  (%p1254_p5), %s1321_s29, 512, %s539_s30, %s514_s7, %s1142_s12, %s1142_s12, %s1143_s10  }
  0xe5   : > { %v481_v7 = vrot.slane %v480_v4, 4  ;;  %v504_v8 = vadd.f32 %v503_v6, %v497_v5  ;;  %s550_s17 = scalar_lea.hbm %s1414_s4, %s1128_s21  ;;  %s518_s29 = sand.u32 1, %s1205_s24   ;;  %v489_v20 = vld [vmem:[%s1305_s6] sm:$0x1] }
  0xe6   : > { %s563_s8 = scalar_lea.hbm %s1415_s5, %s1128_s21  ;;  %s552_s25 = sshll.u32 %s1301_s26, 4  ;;  %s553_s25 = int_to_ptr.vmem [resolvable:$true] %s552_s25 }
  0xe7   : > { %v482_v9 = vadd.f32 %v481_v7, %v480_v4  ;;  %v505_v10 = vrot.slane %v504_v8, 4  ;;  %s1348_s15 = sshll.u32 %s550_s17, 4  ;;  %s565_s13 = sshll.u32 %s1305_s6, 4  ;;  %s555_s15 = int_to_ptr.hbm [resolvable:$true] %s1348_s15  ;;  %s1356_s13 = int_to_ptr.vmem [resolvable:$true] %s565_s13 }
  0xe8   : > { %s1352_s1 = sshll.u32 %s563_s8, 4  ;;  %s519_s21 = scalar_lea.sflag [#allocation9], %s518_s29  ;;  %s568_s1 = int_to_ptr.hbm [resolvable:$true] %s1352_s1 }
  0xe9   : > { %v483_v11 = vrot.slane %v482_v9, 2  ;;  %v506_v12 = vadd.f32 %v505_v10, %v504_v8  ;;  %s1032_s24 = sshra.s32 %s555_s15, 4  ;;  %s1038_s10 = scalar_lea.hbm %s1414_s4, 2  ;;  %s1033_s24 = int_to_ptr.hbm [resolvable:$true] %s1032_s24 }
  0xea   : > { %s1034_s23 = scalar_lea.hbm %s1033_s24, 1  ;;  %p1039_p2 = scmp.lt.s32.totalorder %s1033_s24, %s1414_s4 }
  0xeb   : > { %v484_v13 = vadd.f32 %v483_v11, %v482_v9  ;;  %v507_v14 = vrot.slane %v506_v12, 2  ;;  %p1035_p3 = scmp.ne.s32.totalorder %s1033_s24, %s1034_s23  ;;  %p1040_p1 = scmp.lt.s32.totalorder %s1038_s10, %s1034_s23 }
  0xed   : > { %v485_v15 = vrot.slane %v484_v13, 1  ;;  %v508_v16 = vadd.f32 %v507_v14, %v506_v12  ;;  %p1036_p7 = pnand %p1035_p3, %p1254_p5  ;;  %p1041_p4 = por %p1040_p1, %p1039_p2 }
  0xef   : > { %v486_v18 = vadd.f32 %v485_v15, %v484_v13  ;;  %v509_v19 = vrot.slane %v508_v16, 1  ;;  %p1037_p9 = pneg %p1036_p7 }
  0xf1   : > { %v510_v21 = vadd.f32 %v509_v19, %v508_v16  ;;  %v487_v22 = vadd.f32 %v486_v18, %v473_v17  ;;  %p1042_p8 = pnand %p1041_p4, %p1037_p9 }
  0xf3   : > { %488 = vst [vmem:[%s1301_s26] sm:$0x1] %v487_v22  ;;  %v511_v23 = vadd.f32 %v510_v21, %v489_v20 }
  0xf4   : > { %1045 = shalt.err (!%p1042_p8)
}
  0xf5   : > { %848 = dma.vmem_to_hbm [thread:$0]  (%p1254_p5), %s553_s25, 16, %s555_s15, %s519_s21   ;;  %512 = vst [vmem:[%s1305_s6] sm:$0x1] %v511_v23 }
  0xf6   : > { %s1060_s26 = sshra.s32 %s568_s1, 4  ;;  %s1066_s7 = scalar_lea.hbm %s1415_s5, 2  ;;  %s1061_s26 = int_to_ptr.hbm [resolvable:$true] %s1060_s26 }
  0xf7   : > { %s1062_s17 = scalar_lea.hbm %s1061_s26, 1  ;;  %p1067_p0 = scmp.lt.s32.totalorder %s1061_s26, %s1415_s5 }
  0xf8   : > { %p1063_p10 = scmp.ne.s32.totalorder %s1061_s26, %s1062_s17  ;;  %p1068_p3 = scmp.lt.s32.totalorder %s1066_s7, %s1062_s17 }
  0xfa   : > { %p1064_p12 = pnand %p1063_p10, %p1254_p5  ;;  %p1069_p7 = por %p1068_p3, %p1067_p0 }
  0xfc   : > { %p1065_p13 = pneg %p1064_p12 }
  0xfe   : > { %p1070_p9 = pnand %p1069_p7, %p1065_p13 }
 0x100   : > { %1073 = shalt.err (!%p1070_p9)
}
 0x101   : > { %849 = dma.vmem_to_hbm [thread:$0]  (%p1254_p5), %s1356_s13, 16, %s568_s1, %s519_s21  }
 0x102 PF: > { %s1433_s6 = sld [smem:[#allocation15_spill]]  ;;  %s579_s25 = sand.u32 1, %s1116_s18  }
 0x103   : > { %p862_p2 = pnand %p719_p11, %p1221_p6  ;;  %s580_s15 = scalar_lea.sflag [#allocation4], %s579_s25 }
 0x105   : > { %p863_p1 = pneg %p862_p2 }
 0x107   : > { %1107 = dma.done.wait (%p863_p1), %s580_s15, 512  }
 0x108   : > { %1109 = vsyncadd (%p863_p1), %s580_s15, 4294966784  ;;  %s1434_s23 = sadd.s32 4294967294, %s1433_s6  }
 0x109   : > { %s589_s9 = sand.u32 1, %s1434_s23  }
 0x10a   : > { %s590_s14 = scalar_lea.sflag [#allocation9], %s589_s9 }
 0x10b   : > { %1111 = dma.done.wait (%p863_p1), %s590_s14, 32  }
 0x10c   : > { %1113 = vsyncadd (%p863_p1), %s590_s14, 4294967264  ;;  %s26_s23 = sadd.s32 1, %s1433_s6   ;;  %s1435_s27 = sld [smem:[#allocation16_spill]] }
 0x10d   : > { %p23_p5 = scmp.ge.s32.totalorder %s26_s23, 4   ;;  %s1436_s18 = smov %s1120_s19 }
 0x10e   : > { %s1437_s19 = smov %s1124_s20  ;;  %s1438_s20 = smov %s1263_s28 }
 0x10f   : > { %s1439_s21 = smov %s1132_s22  ;;  %25 = sbr.rel (!%p23_p5) target bundleno = 11 (0xb), region = 117 }
 0x112   : > { %s1440_s22 = smov %s1435_s27 }
 0x114   :  { %604 = vsyncpa [#allocation3], 1 }
 0x115   :  { %606 = vsyncpa [#allocation3 + $0x1], 1 }
 0x116   :  { %607 = vsyncpa [#allocation6], 1 }
 0x117   :  { %608 = vsyncpa [#allocation4], 1 }
 0x118   :  { %610 = vsyncpa [#allocation4 + $0x1], 1 }
 0x119   :  { %611 = vsyncpa [#allocation9], 1 }
 0x11a   :  { %613 = vsyncpa [#allocation9 + $0x1], 1 }

</bundles_post_ra>
